<compile_context>
chip_gen: v7x
topology: tpu7x:2x2x1
jax: 0.10.0
libtpu: 0.0.40
codegen_flags: <defaults>
</compile_context>

<pallas_src>
import jax
import jax.numpy as jnp
from jax import lax
from jax.experimental import pallas as pl
from jax.experimental.pallas import tpu as pltpu

_NEG = -1e30  # effectively -inf for padded logit columns (exp underflows to 0)


def _round_up(n, m):
    return ((n + m - 1) // m) * m


def rnn_seq_kernel(x_ref, h0_ref, wxh_ref, bh_ref, whh_ref, who_ref, bho_ref,
                   out_ref, hN_ref, xproj_ref, hall_ref):
    """Grid = (batch_tiles,).  Whole sequence handled in one grid step:
    Phase 0: batched input projection; Phase 1: serial tanh recurrence;
    Phase 2: batched h2o + log_softmax."""
    T, TB, I_pad = x_ref.shape
    O_pad = out_ref.shape[-1]

    # ---- Phase 0: batched, non-recurrent input projection (one MXU matmul) --
    x2 = x_ref[...].reshape(T * TB, I_pad)
    xproj_ref[...] = jnp.dot(
        x2, wxh_ref[...], preferred_element_type=jnp.float32) + bh_ref[...]

    # ---- Phase 1: serial recurrence; only h @ W_hh is on the critical path --
    whh = whh_ref[...]  # hoisted: loaded once for all timesteps

    def step(t, h):
        off = pl.multiple_of(t * TB, TB)
        pre = xproj_ref[pl.ds(off, TB), :] + jnp.dot(
            h, whh, preferred_element_type=jnp.float32)
        h_new = jnp.tanh(pre)
        # nn.Dropout(0.5): eval-mode identity.
        hall_ref[pl.ds(off, TB), :] = h_new
        return h_new

    h_last = lax.fori_loop(0, T, step, h0_ref[...], unroll=True)
    hN_ref[...] = h_last  # final hidden written once

    # ---- Phase 2: batched h2o + numerically-stable log_softmax --------------
    logits = jnp.dot(hall_ref[...], who_ref[...],
                     preferred_element_type=jnp.float32) + bho_ref[...]
    m = jnp.max(logits, axis=-1, keepdims=True)
    z = logits - m
    lse = jnp.log(jnp.sum(jnp.exp(z), axis=-1, keepdims=True))
    out_ref[...] = (z - lse).reshape(T, TB, O_pad)  # single lane-dense store


def _prepare_padded_weights(params, i_pad, h_pad, o_pad):
    """Fold i2e into i2h, combine biases, and zero-pad to lane-dense shapes."""
    we, be, wih, bih, whh, bhh, who, bho = params
    I = we.shape[0]
    H = whh.shape[0]
    O = who.shape[1]

    w_xh = we @ wih                      # (I, H)  exact linear fold of i2e∘i2h
    b_h = be @ wih + bih + bhh           # (1, H)  all recurrent biases combined

    w_xh_p = jnp.zeros((i_pad, h_pad), jnp.float32).at[:I, :H].set(w_xh)
    whh_p = jnp.zeros((h_pad, h_pad), jnp.float32).at[:H, :H].set(whh)
    b_h_p = jnp.zeros((1, h_pad), jnp.float32).at[:, :H].set(b_h)
    who_p = jnp.zeros((h_pad, o_pad), jnp.float32).at[:H, :O].set(who)
    # Padded logit columns get -1e30 so they vanish inside log_softmax.
    bho_p = jnp.full((1, o_pad), _NEG, jnp.float32).at[:, :O].set(bho)
    return w_xh_p, b_h_p, whh_p, who_p, bho_p


@jax.jit
def rnn_sequence_forward(xs, h0, params):
    """xs: (T, B, input_size), h0: (B, hidden_size).
    Returns (log_probs: (T, B, output_size), final_hidden: (B, hidden_size))."""
    T, B, I = xs.shape
    H = h0.shape[1]
    O = params[7].shape[1]

    B_pad = _round_up(B, 8)      # sublane alignment
    I_pad = _round_up(I, 128)    # lane alignment
    H_pad = _round_up(H, 128)
    O_pad = _round_up(O, 128)

    wxh, b_h, whh_p, who_p, bho_p = _prepare_padded_weights(
        params, I_pad, H_pad, O_pad)

    xs_p = jnp.zeros((T, B_pad, I_pad), jnp.float32).at[:, :B, :I].set(
        xs.astype(jnp.float32))
    h0_p = jnp.zeros((B_pad, H_pad), jnp.float32).at[:B, :H].set(
        h0.astype(jnp.float32))

    # TB = 8 sublanes: with B_pad >= 16 the "parallel" batch-tile axis has
    # >1 iteration and shards across v7x's two TensorCores.
    TB = 8
    grid = (B_pad // TB,)

    out_shapes = (
        jax.ShapeDtypeStruct((T, B_pad, O_pad), jnp.float32),   # log-probs
        jax.ShapeDtypeStruct((B_pad, H_pad), jnp.float32),      # final hidden
    )

    in_specs = [
        pl.BlockSpec((T, TB, I_pad), lambda b: (0, b, 0)),      # xs (whole seq)
        pl.BlockSpec((TB, H_pad), lambda b: (b, 0)),            # h0
        pl.BlockSpec((I_pad, H_pad), lambda b: (0, 0)),         # W_xh (folded i2e∘i2h)
        pl.BlockSpec((1, H_pad), lambda b: (0, 0)),             # combined recurrent bias
        pl.BlockSpec((H_pad, H_pad), lambda b: (0, 0)),         # W_hh
        pl.BlockSpec((H_pad, O_pad), lambda b: (0, 0)),         # W_ho
        pl.BlockSpec((1, O_pad), lambda b: (0, 0)),             # b_ho (padded -1e30)
    ]
    out_specs = [
        pl.BlockSpec((T, TB, O_pad), lambda b: (0, b, 0)),      # log-probs slab
        pl.BlockSpec((TB, H_pad), lambda b: (b, 0)),            # final hidden
    ]

    out_p, h_p = pl.pallas_call(
        rnn_seq_kernel,
        out_shape=out_shapes,
        grid=grid,
        in_specs=in_specs,
        out_specs=out_specs,
        scratch_shapes=[
            pltpu.VMEM((T * TB, H_pad), jnp.float32),   # x_proj (all timesteps)
            pltpu.VMEM((T * TB, H_pad), jnp.float32),   # per-step hiddens
        ],
        compiler_params=pltpu.CompilerParams(
            dimension_semantics=("parallel",)),
    )(xs_p, h0_p, wxh, b_h, whh_p, who_p, bho_p)

    return out_p[:, :B, :O], h_p[:B, :H]


def rnn_forward(x, h, params):
    """Single-step API matching the PyTorch module's forward(input, hidden)."""
    out, h_new = rnn_sequence_forward(x[None], h, params)
    return out[0], h_new


def init_params(key, input_size, emb_size, hidden_size, output_size):
    """Deterministic init mimicking nn.Linear (uniform +/- 1/sqrt(fan_in)).
    Weights stored as (in_features, out_features)."""
    ks = jax.random.split(key, 8)

    def linear(kw, kb, fan_in, fan_out):
        bound = 1.0 / jnp.sqrt(fan_in)
        w = jax.random.uniform(kw, (fan_in, fan_out), jnp.float32, -bound, bound)
        b = jax.random.uniform(kb, (1, fan_out), jnp.float32, -bound, bound)
        return w, b

    we, be = linear(ks[0], ks[1], input_size, emb_size)
    wih, bih = linear(ks[2], ks[3], emb_size, hidden_size)
    whh, bhh = linear(ks[4], ks[5], hidden_size, hidden_size)
    who, bho = linear(ks[6], ks[7], hidden_size, output_size)
    return (we, be, wih, bih, whh, bhh, who, bho)


def rnn_cell_ref(x, h, params):
    """Plain-JAX reference matching the PyTorch module (un-folded weights)."""
    we, be, wih, bih, whh, bhh, who, bho = params
    emb = x.astype(jnp.float32) @ we + be
    h_new = jnp.tanh(emb @ wih + bih + h @ whh + bhh)
    logits = h_new @ who + bho
    return jax.nn.log_softmax(logits, axis=1), h_new


def rnn_sequence_ref(xs, h0, params):
    def step(h, x):
        out, h_new = rnn_cell_ref(x, h, params)
        return h_new, out
    h_final, outs = jax.lax.scan(step, h0, xs)
    return outs, h_final


if __name__ == "__main__":
    input_size, emb_size, hidden_size, output_size = 16, 32, 32, 8
    batch, seq_len = 2, 8

    key = jax.random.PRNGKey(0)
    k_params, k_x = jax.random.split(key, 2)

    params = init_params(k_params, input_size, emb_size, hidden_size, output_size)
    xs = jax.random.normal(k_x, (seq_len, batch, input_size), jnp.float32)
    hidden0 = jnp.zeros((batch, hidden_size), jnp.float32)   # initHidden(batch)

    # Fused-sequence kernel (one pallas_call / one grid step for all timesteps).
    out_seq, h_final = rnn_sequence_forward(xs, hidden0, params)
    out_seq = jax.block_until_ready(out_seq)
    h_final = jax.block_until_ready(h_final)

    out_ref, h_ref = rnn_sequence_ref(xs, hidden0, params)
    assert out_seq.shape == (seq_len, batch, output_size)
    assert h_final.shape == (batch, hidden_size)
    # The i2e/i2h fold is algebraically exact; f32 rounding differs slightly.
    assert jnp.allclose(out_seq, out_ref, atol=1e-4, rtol=1e-4), "sequence log_softmax mismatch"
    assert jnp.allclose(h_final, h_ref, atol=1e-4, rtol=1e-4), "final hidden mismatch"

    # Single-step API (original module semantics: forward(input, hidden)).
    out1, h1 = rnn_forward(xs[0], hidden0, params)
    out1 = jax.block_until_ready(out1)
    out1_ref, h1_ref = rnn_cell_ref(xs[0], hidden0, params)
    assert jnp.allclose(out1, out1_ref, atol=1e-4, rtol=1e-4), "single-step output mismatch"
    assert jnp.allclose(h1, h1_ref, atol=1e-4, rtol=1e-4), "single-step hidden mismatch"

    print("KERNEL_OK")
</pallas_src>

<mosaic_0001>
module attributes {stable_mosaic.version = 11 : i64} {
  func.func @rnn_seq_kernel(%arg0: i32, %arg1: memref<8x8x128xf32, #tpu.memory_space<vmem>>, %arg2: memref<8x128xf32, #tpu.memory_space<vmem>>, %arg3: memref<128x128xf32, #tpu.memory_space<vmem>>, %arg4: memref<1x128xf32, #tpu.memory_space<vmem>>, %arg5: memref<128x128xf32, #tpu.memory_space<vmem>>, %arg6: memref<128x128xf32, #tpu.memory_space<vmem>>, %arg7: memref<1x128xf32, #tpu.memory_space<vmem>>, %arg8: memref<8x8x128xf32, #tpu.memory_space<vmem>>, %arg9: memref<8x128xf32, #tpu.memory_space<vmem>>, %arg10: memref<64x128xf32, #tpu.memory_space<vmem>>, %arg11: memref<64x128xf32, #tpu.memory_space<vmem>>) attributes {dimension_semantics = [#tpu.dimension_semantics<parallel>], iteration_bounds = array<i64: 1>, scalar_prefetch = 0 : i64, scratch_operands = 2 : i64, tpu.core_type = #tpu.core_type<tc>, window_params = [{transform_indices = @transform_0, window_bounds = array<i64: 8, 8, 128>}, {transform_indices = @transform_1, window_bounds = array<i64: 8, 128>}, {pipeline_mode = #tpu.pipeline_mode<synchronous>, transform_indices = @transform_2, window_bounds = array<i64: 128, 128>}, {pipeline_mode = #tpu.pipeline_mode<synchronous>, transform_indices = @transform_3, window_bounds = array<i64: 1, 128>}, {pipeline_mode = #tpu.pipeline_mode<synchronous>, transform_indices = @transform_4, window_bounds = array<i64: 128, 128>}, {pipeline_mode = #tpu.pipeline_mode<synchronous>, transform_indices = @transform_5, window_bounds = array<i64: 128, 128>}, {pipeline_mode = #tpu.pipeline_mode<synchronous>, transform_indices = @transform_6, window_bounds = array<i64: 1, 128>}, {transform_indices = @transform_7, window_bounds = array<i64: 8, 8, 128>}, {transform_indices = @transform_8, window_bounds = array<i64: 8, 128>}]} {
    %c0 = arith.constant 0 : index
    %c0_0 = arith.constant 0 : index
    %c0_1 = arith.constant 0 : index
    %0 = vector.load %arg1[%c0, %c0_0, %c0_1] : memref<8x8x128xf32, #tpu.memory_space<vmem>>, vector<8x8x128xf32>
    %1 = vector.shape_cast %0 : vector<8x8x128xf32> to vector<64x128xf32>
    %c0_2 = arith.constant 0 : index
    %c0_3 = arith.constant 0 : index
    %2 = vector.load %arg3[%c0_2, %c0_3] : memref<128x128xf32, #tpu.memory_space<vmem>>, vector<128x128xf32>
    %cst = arith.constant dense<0.000000e+00> : vector<64x128xf32>
    %3 = tpu.matmul %1, %2, %cst {dimension_numbers = #tpu.dot_dimension_numbers<[1], [0], [0], [1], [0, 0, 1, 1], [], []>} : vector<64x128xf32>, vector<128x128xf32>, vector<64x128xf32> -> vector<64x128xf32>
    %c0_4 = arith.constant 0 : index
    %c0_5 = arith.constant 0 : index
    %4 = vector.load %arg4[%c0_4, %c0_5] : memref<1x128xf32, #tpu.memory_space<vmem>>, vector<1x128xf32>
    %5 = vector.broadcast %4 : vector<1x128xf32> to vector<64x128xf32>
    %6 = arith.addf %3, %5 : vector<64x128xf32>
    %c0_6 = arith.constant 0 : index
    %c0_7 = arith.constant 0 : index
    %7 = vector.load %arg10[%c0_6, %c0_7] : memref<64x128xf32, #tpu.memory_space<vmem>>, vector<64x128xf32>
    tpu.vector_store %arg10[%c0_6, %c0_7], %6 {strides = array<i32>} : memref<64x128xf32, #tpu.memory_space<vmem>>, vector<64x128xf32>,
    %c0_8 = arith.constant 0 : index
    %c0_9 = arith.constant 0 : index
    %8 = vector.load %arg5[%c0_8, %c0_9] : memref<128x128xf32, #tpu.memory_space<vmem>>, vector<128x128xf32>
    %c0_10 = arith.constant 0 : index
    %c0_11 = arith.constant 0 : index
    %9 = vector.load %arg2[%c0_10, %c0_11] : memref<8x128xf32, #tpu.memory_space<vmem>>, vector<8x128xf32>
    %c0_i32 = arith.constant 0 : i32
    %c8_i32 = arith.constant 8 : i32
    %10 = arith.muli %c0_i32, %c8_i32 : i32
    %11 = tpu.assume_multiple %10, 8 : i32
    %12 = arith.index_cast %11 : i32 to index
    %c0_12 = arith.constant 0 : index
    %13 = vector.load %arg10[%12, %c0_12] : memref<64x128xf32, #tpu.memory_space<vmem>>, vector<8x128xf32>
    %cst_13 = arith.constant dense<0.000000e+00> : vector<8x128xf32>
    %14 = tpu.matmul %9, %8, %cst_13 {dimension_numbers = #tpu.dot_dimension_numbers<[1], [0], [0], [1], [0, 0, 1, 1], [], []>} : vector<8x128xf32>, vector<128x128xf32>, vector<8x128xf32> -> vector<8x128xf32>
    %15 = arith.addf %13, %14 : vector<8x128xf32>
    %16 = math.tanh %15 : vector<8x128xf32>
    %17 = arith.index_cast %11 : i32 to index
    %c0_14 = arith.constant 0 : index
    %18 = vector.load %arg11[%17, %c0_14] : memref<64x128xf32, #tpu.memory_space<vmem>>, vector<8x128xf32>
    tpu.vector_store %arg11[%17, %c0_14], %16 {strides = array<i32>} : memref<64x128xf32, #tpu.memory_space<vmem>>, vector<8x128xf32>,
    %c1_i32 = arith.constant 1 : i32
    %c8_i32_15 = arith.constant 8 : i32
    %19 = arith.muli %c1_i32, %c8_i32_15 : i32
    %20 = tpu.assume_multiple %19, 8 : i32
    %21 = arith.index_cast %20 : i32 to index
    %c0_16 = arith.constant 0 : index
    %22 = vector.load %arg10[%21, %c0_16] : memref<64x128xf32, #tpu.memory_space<vmem>>, vector<8x128xf32>
    %cst_17 = arith.constant dense<0.000000e+00> : vector<8x128xf32>
    %23 = tpu.matmul %16, %8, %cst_17 {dimension_numbers = #tpu.dot_dimension_numbers<[1], [0], [0], [1], [0, 0, 1, 1], [], []>} : vector<8x128xf32>, vector<128x128xf32>, vector<8x128xf32> -> vector<8x128xf32>
    %24 = arith.addf %22, %23 : vector<8x128xf32>
    %25 = math.tanh %24 : vector<8x128xf32>
    %26 = arith.index_cast %20 : i32 to index
    %c0_18 = arith.constant 0 : index
    %27 = vector.load %arg11[%26, %c0_18] : memref<64x128xf32, #tpu.memory_space<vmem>>, vector<8x128xf32>
    tpu.vector_store %arg11[%26, %c0_18], %25 {strides = array<i32>} : memref<64x128xf32, #tpu.memory_space<vmem>>, vector<8x128xf32>,
    %c2_i32 = arith.constant 2 : i32
    %c8_i32_19 = arith.constant 8 : i32
    %28 = arith.muli %c2_i32, %c8_i32_19 : i32
    %29 = tpu.assume_multiple %28, 8 : i32
    %30 = arith.index_cast %29 : i32 to index
    %c0_20 = arith.constant 0 : index
    %31 = vector.load %arg10[%30, %c0_20] : memref<64x128xf32, #tpu.memory_space<vmem>>, vector<8x128xf32>
    %cst_21 = arith.constant dense<0.000000e+00> : vector<8x128xf32>
    %32 = tpu.matmul %25, %8, %cst_21 {dimension_numbers = #tpu.dot_dimension_numbers<[1], [0], [0], [1], [0, 0, 1, 1], [], []>} : vector<8x128xf32>, vector<128x128xf32>, vector<8x128xf32> -> vector<8x128xf32>
    %33 = arith.addf %31, %32 : vector<8x128xf32>
    %34 = math.tanh %33 : vector<8x128xf32>
    %35 = arith.index_cast %29 : i32 to index
    %c0_22 = arith.constant 0 : index
    %36 = vector.load %arg11[%35, %c0_22] : memref<64x128xf32, #tpu.memory_space<vmem>>, vector<8x128xf32>
    tpu.vector_store %arg11[%35, %c0_22], %34 {strides = array<i32>} : memref<64x128xf32, #tpu.memory_space<vmem>>, vector<8x128xf32>,
    %c3_i32 = arith.constant 3 : i32
    %c8_i32_23 = arith.constant 8 : i32
    %37 = arith.muli %c3_i32, %c8_i32_23 : i32
    %38 = tpu.assume_multiple %37, 8 : i32
    %39 = arith.index_cast %38 : i32 to index
    %c0_24 = arith.constant 0 : index
    %40 = vector.load %arg10[%39, %c0_24] : memref<64x128xf32, #tpu.memory_space<vmem>>, vector<8x128xf32>
    %cst_25 = arith.constant dense<0.000000e+00> : vector<8x128xf32>
    %41 = tpu.matmul %34, %8, %cst_25 {dimension_numbers = #tpu.dot_dimension_numbers<[1], [0], [0], [1], [0, 0, 1, 1], [], []>} : vector<8x128xf32>, vector<128x128xf32>, vector<8x128xf32> -> vector<8x128xf32>
    %42 = arith.addf %40, %41 : vector<8x128xf32>
    %43 = math.tanh %42 : vector<8x128xf32>
    %44 = arith.index_cast %38 : i32 to index
    %c0_26 = arith.constant 0 : index
    %45 = vector.load %arg11[%44, %c0_26] : memref<64x128xf32, #tpu.memory_space<vmem>>, vector<8x128xf32>
    tpu.vector_store %arg11[%44, %c0_26], %43 {strides = array<i32>} : memref<64x128xf32, #tpu.memory_space<vmem>>, vector<8x128xf32>,
    %c4_i32 = arith.constant 4 : i32
    %c8_i32_27 = arith.constant 8 : i32
    %46 = arith.muli %c4_i32, %c8_i32_27 : i32
    %47 = tpu.assume_multiple %46, 8 : i32
    %48 = arith.index_cast %47 : i32 to index
    %c0_28 = arith.constant 0 : index
    %49 = vector.load %arg10[%48, %c0_28] : memref<64x128xf32, #tpu.memory_space<vmem>>, vector<8x128xf32>
    %cst_29 = arith.constant dense<0.000000e+00> : vector<8x128xf32>
    %50 = tpu.matmul %43, %8, %cst_29 {dimension_numbers = #tpu.dot_dimension_numbers<[1], [0], [0], [1], [0, 0, 1, 1], [], []>} : vector<8x128xf32>, vector<128x128xf32>, vector<8x128xf32> -> vector<8x128xf32>
    %51 = arith.addf %49, %50 : vector<8x128xf32>
    %52 = math.tanh %51 : vector<8x128xf32>
    %53 = arith.index_cast %47 : i32 to index
    %c0_30 = arith.constant 0 : index
    %54 = vector.load %arg11[%53, %c0_30] : memref<64x128xf32, #tpu.memory_space<vmem>>, vector<8x128xf32>
    tpu.vector_store %arg11[%53, %c0_30], %52 {strides = array<i32>} : memref<64x128xf32, #tpu.memory_space<vmem>>, vector<8x128xf32>,
    %c5_i32 = arith.constant 5 : i32
    %c8_i32_31 = arith.constant 8 : i32
    %55 = arith.muli %c5_i32, %c8_i32_31 : i32
    %56 = tpu.assume_multiple %55, 8 : i32
    %57 = arith.index_cast %56 : i32 to index
    %c0_32 = arith.constant 0 : index
    %58 = vector.load %arg10[%57, %c0_32] : memref<64x128xf32, #tpu.memory_space<vmem>>, vector<8x128xf32>
    %cst_33 = arith.constant dense<0.000000e+00> : vector<8x128xf32>
    %59 = tpu.matmul %52, %8, %cst_33 {dimension_numbers = #tpu.dot_dimension_numbers<[1], [0], [0], [1], [0, 0, 1, 1], [], []>} : vector<8x128xf32>, vector<128x128xf32>, vector<8x128xf32> -> vector<8x128xf32>
    %60 = arith.addf %58, %59 : vector<8x128xf32>
    %61 = math.tanh %60 : vector<8x128xf32>
    %62 = arith.index_cast %56 : i32 to index
    %c0_34 = arith.constant 0 : index
    %63 = vector.load %arg11[%62, %c0_34] : memref<64x128xf32, #tpu.memory_space<vmem>>, vector<8x128xf32>
    tpu.vector_store %arg11[%62, %c0_34], %61 {strides = array<i32>} : memref<64x128xf32, #tpu.memory_space<vmem>>, vector<8x128xf32>,
    %c6_i32 = arith.constant 6 : i32
    %c8_i32_35 = arith.constant 8 : i32
    %64 = arith.muli %c6_i32, %c8_i32_35 : i32
    %65 = tpu.assume_multiple %64, 8 : i32
    %66 = arith.index_cast %65 : i32 to index
    %c0_36 = arith.constant 0 : index
    %67 = vector.load %arg10[%66, %c0_36] : memref<64x128xf32, #tpu.memory_space<vmem>>, vector<8x128xf32>
    %cst_37 = arith.constant dense<0.000000e+00> : vector<8x128xf32>
    %68 = tpu.matmul %61, %8, %cst_37 {dimension_numbers = #tpu.dot_dimension_numbers<[1], [0], [0], [1], [0, 0, 1, 1], [], []>} : vector<8x128xf32>, vector<128x128xf32>, vector<8x128xf32> -> vector<8x128xf32>
    %69 = arith.addf %67, %68 : vector<8x128xf32>
    %70 = math.tanh %69 : vector<8x128xf32>
    %71 = arith.index_cast %65 : i32 to index
    %c0_38 = arith.constant 0 : index
    %72 = vector.load %arg11[%71, %c0_38] : memref<64x128xf32, #tpu.memory_space<vmem>>, vector<8x128xf32>
    tpu.vector_store %arg11[%71, %c0_38], %70 {strides = array<i32>} : memref<64x128xf32, #tpu.memory_space<vmem>>, vector<8x128xf32>,
    %c7_i32 = arith.constant 7 : i32
    %c8_i32_39 = arith.constant 8 : i32
    %73 = arith.muli %c7_i32, %c8_i32_39 : i32
    %74 = tpu.assume_multiple %73, 8 : i32
    %75 = arith.index_cast %74 : i32 to index
    %c0_40 = arith.constant 0 : index
    %76 = vector.load %arg10[%75, %c0_40] : memref<64x128xf32, #tpu.memory_space<vmem>>, vector<8x128xf32>
    %cst_41 = arith.constant dense<0.000000e+00> : vector<8x128xf32>
    %77 = tpu.matmul %70, %8, %cst_41 {dimension_numbers = #tpu.dot_dimension_numbers<[1], [0], [0], [1], [0, 0, 1, 1], [], []>} : vector<8x128xf32>, vector<128x128xf32>, vector<8x128xf32> -> vector<8x128xf32>
    %78 = arith.addf %76, %77 : vector<8x128xf32>
    %79 = math.tanh %78 : vector<8x128xf32>
    %80 = arith.index_cast %74 : i32 to index
    %c0_42 = arith.constant 0 : index
    %81 = vector.load %arg11[%80, %c0_42] : memref<64x128xf32, #tpu.memory_space<vmem>>, vector<8x128xf32>
    tpu.vector_store %arg11[%80, %c0_42], %79 {strides = array<i32>} : memref<64x128xf32, #tpu.memory_space<vmem>>, vector<8x128xf32>,
    %c8_i32_43 = arith.constant 8 : i32
    %c0_44 = arith.constant 0 : index
    %c0_45 = arith.constant 0 : index
    %82 = vector.load %arg9[%c0_44, %c0_45] : memref<8x128xf32, #tpu.memory_space<vmem>>, vector<8x128xf32>
    tpu.vector_store %arg9[%c0_44, %c0_45], %79 {strides = array<i32>} : memref<8x128xf32, #tpu.memory_space<vmem>>, vector<8x128xf32>,
    %c0_46 = arith.constant 0 : index
    %c0_47 = arith.constant 0 : index
    %83 = vector.load %arg11[%c0_46, %c0_47] : memref<64x128xf32, #tpu.memory_space<vmem>>, vector<64x128xf32>
    %c0_48 = arith.constant 0 : index
    %c0_49 = arith.constant 0 : index
    %84 = vector.load %arg6[%c0_48, %c0_49] : memref<128x128xf32, #tpu.memory_space<vmem>>, vector<128x128xf32>
    %cst_50 = arith.constant dense<0.000000e+00> : vector<64x128xf32>
    %85 = tpu.matmul %83, %84, %cst_50 {dimension_numbers = #tpu.dot_dimension_numbers<[1], [0], [0], [1], [0, 0, 1, 1], [], []>} : vector<64x128xf32>, vector<128x128xf32>, vector<64x128xf32> -> vector<64x128xf32>
    %c0_51 = arith.constant 0 : index
    %c0_52 = arith.constant 0 : index
    %86 = vector.load %arg7[%c0_51, %c0_52] : memref<1x128xf32, #tpu.memory_space<vmem>>, vector<1x128xf32>
    %87 = vector.broadcast %86 : vector<1x128xf32> to vector<64x128xf32>
    %88 = arith.addf %85, %87 : vector<64x128xf32>
    %cst_53 = arith.constant dense<0xFF800000> : vector<64xf32>
    %89 = vector.multi_reduction <maximumf>, %88, %cst_53 [1] : vector<64x128xf32> to vector<64xf32>
    %90 = vector.shape_cast %89 : vector<64xf32> to vector<64x1xf32>
    %91 = vector.broadcast %90 : vector<64x1xf32> to vector<64x128xf32>
    %92 = arith.subf %88, %91 : vector<64x128xf32>
    %93 = math.exp %92 : vector<64x128xf32>
    %cst_54 = arith.constant dense<0.000000e+00> : vector<64xf32>
    %94 = vector.multi_reduction <add>, %93, %cst_54 [1] : vector<64x128xf32> to vector<64xf32>
    %95 = vector.shape_cast %94 : vector<64xf32> to vector<64x1xf32>
    %96 = math.log %95 : vector<64x1xf32>
    %97 = vector.broadcast %96 : vector<64x1xf32> to vector<64x128xf32>
    %98 = arith.subf %92, %97 : vector<64x128xf32>
    %99 = vector.shape_cast %98 : vector<64x128xf32> to vector<8x8x128xf32>
    %c0_55 = arith.constant 0 : index
    %c0_56 = arith.constant 0 : index
    %c0_57 = arith.constant 0 : index
    %100 = vector.load %arg8[%c0_55, %c0_56, %c0_57] : memref<8x8x128xf32, #tpu.memory_space<vmem>>, vector<8x8x128xf32>
    tpu.vector_store %arg8[%c0_55, %c0_56, %c0_57], %99 {strides = array<i32>} : memref<8x8x128xf32, #tpu.memory_space<vmem>>, vector<8x8x128xf32>,
    return
  }
  func.func @transform_0(%arg0: i32) -> (i32, i32, i32) {
    %c0_i32 = arith.constant 0 : i32
    %c0_i32_0 = arith.constant 0 : i32
    %c0_i32_1 = arith.constant 0 : i32
    return %c0_i32, %arg0, %c0_i32_0 : i32, i32, i32
  }
  func.func @transform_1(%arg0: i32) -> (i32, i32) {
    %c0_i32 = arith.constant 0 : i32
    %c0_i32_0 = arith.constant 0 : i32
    return %arg0, %c0_i32 : i32, i32
  }
  func.func @transform_2(%arg0: i32) -> (i32, i32) {
    %c0_i32 = arith.constant 0 : i32
    %c0_i32_0 = arith.constant 0 : i32
    %c0_i32_1 = arith.constant 0 : i32
    return %c0_i32, %c0_i32_0 : i32, i32
  }
  func.func @transform_3(%arg0: i32) -> (i32, i32) {
    %c0_i32 = arith.constant 0 : i32
    %c0_i32_0 = arith.constant 0 : i32
    %c0_i32_1 = arith.constant 0 : i32
    return %c0_i32, %c0_i32_0 : i32, i32
  }
  func.func @transform_4(%arg0: i32) -> (i32, i32) {
    %c0_i32 = arith.constant 0 : i32
    %c0_i32_0 = arith.constant 0 : i32
    %c0_i32_1 = arith.constant 0 : i32
    return %c0_i32, %c0_i32_0 : i32, i32
  }
  func.func @transform_5(%arg0: i32) -> (i32, i32) {
    %c0_i32 = arith.constant 0 : i32
    %c0_i32_0 = arith.constant 0 : i32
    %c0_i32_1 = arith.constant 0 : i32
    return %c0_i32, %c0_i32_0 : i32, i32
  }
  func.func @transform_6(%arg0: i32) -> (i32, i32) {
    %c0_i32 = arith.constant 0 : i32
    %c0_i32_0 = arith.constant 0 : i32
    %c0_i32_1 = arith.constant 0 : i32
    return %c0_i32, %c0_i32_0 : i32, i32
  }
  func.func @transform_7(%arg0: i32) -> (i32, i32, i32) {
    %c0_i32 = arith.constant 0 : i32
    %c0_i32_0 = arith.constant 0 : i32
    %c0_i32_1 = arith.constant 0 : i32
    return %c0_i32, %arg0, %c0_i32_0 : i32, i32, i32
  }
  func.func @transform_8(%arg0: i32) -> (i32, i32) {
    %c0_i32 = arith.constant 0 : i32
    %c0_i32_0 = arith.constant 0 : i32
    return %arg0, %c0_i32 : i32, i32
  }
}

</mosaic_0001>

<bundles_post_ra>
// kernel: rnn_sequence_forward.1
= control target key start
LH: loop header
LB: loop body
LE: loop exit
PB: predicated region body
PF: predicated region fallthrough
CT: control target
= control target key end

     0   :  { %v1889_v2 = vmov 0.0|0.0   ;;  %vm1890_vm0 = vmmov 0   ;;  %v1891_v4 = vmov 0.0   ;;  %s2367_s2 = inlined_call_operand.vmem [shape: f32[128,128], index: 2, kind: input, shape index: {}]   ;;  %s2368_s4 = inlined_call_operand.vmem [shape: f32[128,128], index: 4, kind: input, shape index: {}]   ;;  %s2369_s0 = inlined_call_operand.vmem [shape: f32[8,8,128], index: 0, kind: input, shape index: {}]   ;;  %s2370_s1 = inlined_call_operand.vmem [shape: f32[8,128], index: 1, kind: input, shape index: {}]   ;;  %s2371_s3 = inlined_call_operand.vmem [shape: f32[1,128], index: 3, kind: input, shape index: {}]   ;;  %s2372_s5 = inlined_call_operand.vmem [shape: f32[128,128], index: 5, kind: input, shape index: {}]   ;;  %s2373_s6 = inlined_call_operand.vmem [shape: f32[1,128], index: 6, kind: input, shape index: {}]   ;;  %s2374_s8 = inlined_call_operand.vmem [shape: f32[8,128], index: 8, kind: output, shape index: {1}]   ;;  %s2375_s7 = inlined_call_operand.vmem [shape: f32[8,8,128], index: 7, kind: output, shape index: {0}]  }
   0x1   :  { %v36_v0 = vld [vmem:[%s2367_s2] sm:$0xff]  ;;  %v37_v1 = vld [vmem:[%s2367_s2 + $0x8] sm:$0xff]  ;;  %1614 = vmatprep.subr.bf16.mxu1 %v1889_v2  ;;  %1290 = vmatprep.mubr.msk.f32.mxu1 %vm1890_vm0, %v1891_v4  ;;  %v38_v7 = vld [vmem:[%s2367_s2 + $0x10] sm:$0xff] }
   0x2   :  { %v172_v3 = vld [vmem:[%s2368_s4] sm:$0xff]  ;;  %v1582_v5 = vpack.c.bf16 %v37_v1, %v36_v0  ;;  %v173_v6 = vld [vmem:[%s2368_s4 + $0x8] sm:$0xff]  ;;  %v39_v8 = vld [vmem:[%s2367_s2 + $0x18] sm:$0xff] }
   0x3   :  { %v1958_v9 = vpack.c.bf16 %v173_v6, %v172_v3  ;;  %v1586_v10 = vpack.c.bf16 %v39_v8, %v38_v7  ;;  %v174_v11 = vld [vmem:[%s2368_s4 + $0x10] sm:$0xff]  ;;  %v175_v12 = vld [vmem:[%s2368_s4 + $0x18] sm:$0xff]  ;;  %v40_v13 = vld [vmem:[%s2367_s2 + $0x20] sm:$0xff] }
   0x4   :  { %1583 = vmatprep.subr.bf16.mxu0 %v1582_v5  ;;  %v41_v14 = vld [vmem:[%s2367_s2 + $0x28] sm:$0xff]  ;;  %v1973_v15 = vpack.c.bf16 %v175_v12, %v174_v11  ;;  %v176_v17 = vld [vmem:[%s2368_s4 + $0x20] sm:$0xff]  ;;  %v42_v19 = vld [vmem:[%s2367_s2 + $0x30] sm:$0xff] }
   0x5   :  { %1585 = vmatpush3.bf16.msra.mxu0 %v1582_v5  ;;  %1616 = vmatpush3.bf16.msra.mxu1 %v1958_v9  ;;  %v1590_v16 = vpack.c.bf16 %v41_v14, %v40_v13  ;;  %v177_v18 = vld [vmem:[%s2368_s4 + $0x28] sm:$0xff]  ;;  %v43_v20 = vld [vmem:[%s2367_s2 + $0x38] sm:$0xff]  ;;  %v178_v23 = vld [vmem:[%s2368_s4 + $0x30] sm:$0xff] }
   0x6   :  { %1587 = vmatprep.subr.bf16.mxu0 %v1586_v10  ;;  %1617 = vmatprep.subr.bf16.mxu1 %v1889_v2  ;;  %v1989_v21 = vpack.c.bf16 %v177_v18, %v176_v17  ;;  %v1594_v22 = vpack.c.bf16 %v43_v20, %v42_v19  ;;  %v179_v24 = vld [vmem:[%s2368_s4 + $0x38] sm:$0xff]  ;;  %v44_v25 = vld [vmem:[%s2367_s2 + $0x40] sm:$0xff]  ;;  %v45_v26 = vld [vmem:[%s2367_s2 + $0x48] sm:$0xff] }
   0x7   :  { %v28_v27 = vld [vmem:[%s2369_s0] sm:$0xff]  ;;  %v2008_v28 = vpack.c.bf16 %v179_v24, %v178_v23  ;;  %v1598_v29 = vpack.c.bf16 %v45_v26, %v44_v25  ;;  %v181_v31 = vld [vmem:[%s2368_s4 + $0x48] sm:$0xff]  ;;  %v46_v32 = vld [vmem:[%s2367_s2 + $0x50] sm:$0xff] }
   0x8   :  { %1246 = vmatprep.mubr.f32.mxu0 %v28_v27  ;;  %v180_v30 = vld [vmem:[%s2368_s4 + $0x40] sm:$0xff]  ;;  %v47_v33 = vld [vmem:[%s2367_s2 + $0x58] sm:$0xff]  ;;  %v182_v36 = vld [vmem:[%s2368_s4 + $0x50] sm:$0xff] }
   0x9   :  { %1589 = vmatpush3.bf16.msra.mxu0 %v1586_v10  ;;  %1619 = vmatpush3.bf16.msra.mxu1 %v1973_v15  ;;  %v2024_v34 = vpack.c.bf16 %v181_v31, %v180_v30  ;;  %v1602_v35 = vpack.c.bf16 %v47_v33, %v46_v32  ;;  %v183_v37 = vld [vmem:[%s2368_s4 + $0x58] sm:$0xff]  ;;  %v48_v38 = vld [vmem:[%s2367_s2 + $0x60] sm:$0xff]  ;;  %v49_v39 = vld [vmem:[%s2367_s2 + $0x68] sm:$0xff] }
   0xa   :  { %1591 = vmatprep.subr.bf16.mxu0 %v1590_v16  ;;  %1620 = vmatprep.subr.bf16.mxu1 %v1889_v2  ;;  %v2040_v40 = vpack.c.bf16 %v183_v37, %v182_v36  ;;  %v1606_v41 = vpack.c.bf16 %v49_v39, %v48_v38  ;;  %v184_v42 = vld [vmem:[%s2368_s4 + $0x60] sm:$0xff]  ;;  %v185_v43 = vld [vmem:[%s2368_s4 + $0x68] sm:$0xff]  ;;  %v50_v44 = vld [vmem:[%s2367_s2 + $0x70] sm:$0xff] }
   0xb   :  { %v51_v45 = vld [vmem:[%s2367_s2 + $0x78] sm:$0xff]  ;;  %v2056_v46 = vpack.c.bf16 %v185_v43, %v184_v42  ;;  %v186_v48 = vld [vmem:[%s2368_s4 + $0x70] sm:$0xff]  ;;  %v29_v51 = vld [vmem:[%s2369_s0 + $0x8] sm:$0xff] }
   0xc   :  { %v1610_v47 = vpack.c.bf16 %v51_v45, %v50_v44  ;;  %v187_v49 = vld [vmem:[%s2368_s4 + $0x78] sm:$0xff]  ;;  %v188_v52 = vld [vmem:[%s2370_s1] sm:$0xff]  ;;  %v30_v53 = vld [vmem:[%s2369_s0 + $0x10] sm:$0xff] }
   0xd   :  { %1593 = vmatpush3.bf16.msra.mxu0 %v1590_v16  ;;  %1622 = vmatpush3.bf16.msra.mxu1 %v1989_v21  ;;  %v2066_v50 = vpack.c.bf16 %v187_v49, %v186_v48  ;;  %v31_v54 = vld [vmem:[%s2369_s0 + $0x18] sm:$0xff]  ;;  %v32_v55 = vld [vmem:[%s2369_s0 + $0x20] sm:$0xff]  ;;  %v33_v56 = vld [vmem:[%s2369_s0 + $0x28] sm:$0xff] }
   0xe   :  { %1595 = vmatprep.subr.bf16.mxu0 %v1594_v22  ;;  %1623 = vmatprep.subr.bf16.mxu1 %v1889_v2  ;;  %v34_v57 = vld [vmem:[%s2369_s0 + $0x30] sm:$0xff]  ;;  %v35_v58 = vld [vmem:[%s2369_s0 + $0x38] sm:$0xff]  ;;  %v2135_v59 = vld [vmem:[%s2371_s3] ss:$0 sm:$0xff] }
   0xf   :  { %v807_v37 = vld [vmem:[%s2372_s5 + $0x18] sm:$0xff]  ;;  %v810_v43 = vld [vmem:[%s2372_s5 + $0x30] sm:$0xff] }
  0x10   :  { %v811_v44 = vld [vmem:[%s2372_s5 + $0x38] sm:$0xff]  ;;  %v814_v49 = vld [vmem:[%s2372_s5 + $0x50] sm:$0xff] }
  0x11   :  { %1597 = vmatpush3.bf16.msra.mxu0 %v1594_v22  ;;  %1625 = vmatpush3.bf16.msra.mxu1 %v2008_v28  ;;  %v1818_v45 = vpack.c.bf16 %v811_v44, %v810_v43 }
  0x12   :  { %1599 = vmatprep.subr.bf16.mxu0 %v1598_v29  ;;  %1626 = vmatprep.subr.bf16.mxu1 %v1889_v2 }
  0x15   :  { %1601 = vmatpush3.bf16.msra.mxu0 %v1598_v29  ;;  %1628 = vmatpush3.bf16.msra.mxu1 %v2024_v34 }
  0x16   :  { %1603 = vmatprep.subr.bf16.mxu0 %v1602_v35  ;;  %1629 = vmatprep.subr.bf16.mxu1 %v1889_v2 }
  0x19   :  { %1605 = vmatpush3.bf16.msra.mxu0 %v1602_v35  ;;  %1631 = vmatpush3.bf16.msra.mxu1 %v2040_v40 }
  0x1a   :  { %1607 = vmatprep.subr.bf16.mxu0 %v1606_v41  ;;  %1632 = vmatprep.subr.bf16.mxu1 %v1889_v2 }
  0x1d   :  { %1609 = vmatpush3.bf16.msra.mxu0 %v1606_v41  ;;  %1634 = vmatpush3.bf16.msra.mxu1 %v2056_v46  ;;  %v809_v41 = vld [vmem:[%s2372_s5 + $0x28] sm:$0xff] }
  0x1e   :  { %1611 = vmatprep.subr.bf16.mxu0 %v1610_v47  ;;  %1635 = vmatprep.subr.bf16.mxu1 %v1889_v2 }
  0x21   :  { %1613 = vmatpush3.bf16.msra.mxu0 %v1610_v47  ;;  %1637 = vmatpush3.bf16.msra.mxu1 %v2066_v50  ;;  %v813_v47 = vld [vmem:[%s2372_s5 + $0x48] sm:$0xff] }
  0x22   :  { %1638 = vmatprep.subr.bf16.mxu0 %v1889_v2  ;;  %1662 = vmatprep.subr.bf16.mxu1 %v1889_v2 }
  0x24   :  { %1247 = vmatmul.mubr.f32.vlgmr.msra.gmra.mrb[0].mxu0 %v29_v51  ;;  %1291 = vmatmul.mubr.f32.vlgmr.msra.gmra.mrb[0].mxu1 %v188_v52  ;;  %v816_v52 = vld [vmem:[%s2372_s5 + $0x60] sm:$0xff] }
  0x25   :  { %1640 = vmatpush3.bf16.msra.mxu0 %v1958_v9  ;;  %1664 = vmatpush3.bf16.msra.mxu1 %v1958_v9 }
  0x26   :  { %1641 = vmatprep.subr.bf16.mxu0 %v1889_v2  ;;  %1665 = vmatprep.subr.bf16.mxu1 %v1889_v2 }
  0x27   :  { %1360 = vmatprep.mubr.msk.f32.mxu1 %vm1890_vm0, %v1891_v4  ;;  %1249 = vmatprep.mubr.f32.mxu0 %v30_v53  ;;  %v817_v53 = vld [vmem:[%s2372_s5 + $0x68] sm:$0xff] }
  0x28   :  { %1250 = vmatmul.mubr.f32.gmra.mrb[2].mxu0 %v31_v54  ;;  %v1830_v54 = vpack.c.bf16 %v817_v53, %v816_v52 }
  0x29   :  { %1643 = vmatpush3.bf16.msra.mxu0 %v1973_v15  ;;  %1667 = vmatpush3.bf16.msra.mxu1 %v1973_v15 }
  0x2a   :  { %1644 = vmatprep.subr.bf16.mxu0 %v1889_v2  ;;  %1668 = vmatprep.subr.bf16.mxu1 %v1889_v2 }
  0x2b   :  { %1252 = vmatprep.mubr.f32.mxu0 %v32_v55  ;;  %v818_v55 = vld [vmem:[%s2372_s5 + $0x70] sm:$0xff] }
  0x2c   :  { %1253 = vmatmul.mubr.f32.gmra.mrb[4].mxu0 %v33_v56  ;;  %v819_v56 = vld [vmem:[%s2372_s5 + $0x78] sm:$0xff] }
  0x2d   :  { %1646 = vmatpush3.bf16.msra.mxu0 %v1989_v21  ;;  %1670 = vmatpush3.bf16.msra.mxu1 %v1989_v21 }
  0x2e   :  { %1647 = vmatprep.subr.bf16.mxu0 %v1889_v2  ;;  %1671 = vmatprep.subr.bf16.mxu1 %v1889_v2 }
  0x2f   :  { %1255 = vmatprep.mubr.f32.mxu0 %v34_v57  ;;  %v1834_v57 = vpack.c.bf16 %v819_v56, %v818_v55 }
  0x30   :  { %1256 = vmatmul.mubr.f32.gmra.mrb[6].mxu0 %v35_v58 }
  0x31   :  { %1649 = vmatpush3.bf16.msra.mxu0 %v2008_v28  ;;  %1673 = vmatpush3.bf16.msra.mxu1 %v2008_v28 }
  0x32   :  { %1650 = vmatprep.subr.bf16.mxu0 %v1889_v2  ;;  %1674 = vmatprep.subr.bf16.mxu1 %v1889_v2 }
  0x33   :  { %1325 = vmatprep.mubr.msk.f32.mxu0 %vm1890_vm0, %v1891_v4 }
  0x35   :  { %1652 = vmatpush3.bf16.msra.mxu0 %v2024_v34  ;;  %1676 = vmatpush3.bf16.msra.mxu1 %v2024_v34 }
  0x36   :  { %1653 = vmatprep.subr.bf16.mxu0 %v1889_v2  ;;  %1677 = vmatprep.subr.bf16.mxu1 %v1889_v2 }
  0x39   :  { %1655 = vmatpush3.bf16.msra.mxu0 %v2040_v40  ;;  %1679 = vmatpush3.bf16.msra.mxu1 %v2040_v40 }
  0x3a   :  { %1656 = vmatprep.subr.bf16.mxu0 %v1889_v2  ;;  %1680 = vmatprep.subr.bf16.mxu1 %v1889_v2 }
  0x3d   :  { %1658 = vmatpush3.bf16.msra.mxu0 %v2056_v46  ;;  %1682 = vmatpush3.bf16.msra.mxu1 %v2056_v46 }
  0x3e   :  { %1659 = vmatprep.subr.bf16.mxu0 %v1889_v2  ;;  %1683 = vmatprep.subr.bf16.mxu1 %v1889_v2 }
  0x41   :  { %1661 = vmatpush3.bf16.msra.mxu0 %v2066_v50  ;;  %1685 = vmatpush3.bf16.msra.mxu1 %v2066_v50 }
  0x42   :  { %1686 = vmatprep.subr.bf16.mxu0 %v1889_v2  ;;  %1710 = vmatprep.subr.bf16.mxu1 %v1889_v2 }
  0xf7   :  { %v1248_v60 = vpop.f32.mrb[0].mxu0  ;;  %v256_v61 = vpop.f32.mrb[0].mxu1 }
  0xf8   :  { %v125_v62 = vpop.f32.mrb[1].mxu0  ;;  %v1292_v63 = vpop.f32.mrb[1].mxu1  ;;  %v131_v12 = vadd.f32 %v1248_v60, %v2135_v59 }
  0xf9   :  { %v126_v0 = vadd.f32 %v2135_v59, %v125_v62 }
  0xfb   :  { %v260_v1 = vadd.f32 %v256_v61, %v126_v0  ;;  %v1251_v5 = vpop.f32.mrb[2].mxu0  ;;  %v1029_v0 = vld [vmem:[%s2373_s6] ss:$0 sm:$0xff] }
  0xfc   :  { %v135_v6 = vpop.f32.mrb[3].mxu0  ;;  %v141_v24 = vadd.f32 %v1251_v5, %v2135_v59 }
  0xfd   :  { %1841 = vtanh.f32 %v260_v1  ;;  %v136_v18 = vadd.f32 %v2135_v59, %v135_v6 }
  0xff   :  { %v2159_v7 = vpop.f32.mrb[4].mxu0 }
 0x100   :  { %v2161_v8 = vpop.f32.mrb[5].mxu0 }
 0x101   :  { %v146_v30 = vadd.f32 %v2135_v59, %v2161_v8 }
 0x103   :  { %v2163_v10 = vpop.f32.mrb[6].mxu0 }
 0x104   :  { %v2165_v11 = vpop.f32.mrb[7].mxu0 }
 0x105   :  { %v156_v58 = vadd.f32 %v2135_v59, %v2165_v11 }
 0x107   :  { %v2138_v3 = vpop.eup %1841 }
 0x108   :  { %1326 = vmatmul.mubr.f32.vlgmr.msra.gmra.mrb[8].mxu0 %v2138_v3 }
 0x109   :  { %1688 = vmatpush3.bf16.msra.mxu0 %v1958_v9  ;;  %1395 = vmatprep.mubr.msk.f32.mxu0 %vm1890_vm0, %v1891_v4 }
 0x10a   :  { %1689 = vmatprep.subr.bf16.mxu0 %v1889_v2 }
 0x10d   :  { %1691 = vmatpush3.bf16.msra.mxu0 %v1973_v15 }
 0x10e   :  { %1692 = vmatprep.subr.bf16.mxu0 %v1889_v2 }
 0x111   :  { %1694 = vmatpush3.bf16.msra.mxu0 %v1989_v21 }
 0x112   :  { %1695 = vmatprep.subr.bf16.mxu0 %v1889_v2 }
 0x115   :  { %1697 = vmatpush3.bf16.msra.mxu0 %v2008_v28 }
 0x116   :  { %1698 = vmatprep.subr.bf16.mxu0 %v1889_v2 }
 0x119   :  { %1700 = vmatpush3.bf16.msra.mxu0 %v2024_v34 }
 0x11a   :  { %1701 = vmatprep.subr.bf16.mxu0 %v1889_v2 }
 0x11d   :  { %1703 = vmatpush3.bf16.msra.mxu0 %v2040_v40 }
 0x11e   :  { %1704 = vmatprep.subr.bf16.mxu0 %v1889_v2 }
 0x121   :  { %1706 = vmatpush3.bf16.msra.mxu0 %v2056_v46 }
 0x122   :  { %1707 = vmatprep.subr.bf16.mxu0 %v1889_v2 }
 0x125   :  { %1709 = vmatpush3.bf16.msra.mxu0 %v2066_v50 }
 0x126   :  { %1734 = vmatprep.subr.bf16.mxu0 %v1889_v2 }
 0x1db   :  { %v331_v13 = vpop.f32.mrb[8].mxu0 }
 0x1dc   :  { %v335_v14 = vadd.f32 %v331_v13, %v131_v12  ;;  %v1327_v16 = vpop.f32.mrb[9].mxu0 }
 0x1de   :  { %1843 = vtanh.f32 %v335_v14 }
 0x1e8   :  { %v2168_v17 = vpop.eup %1843 }
 0x1e9   :  { %1361 = vmatmul.mubr.f32.vlgmr.msra.gmra.mrb[2].mxu1 %v2168_v17 }
 0x1ea   :  { %1712 = vmatpush3.bf16.msra.mxu1 %v1958_v9  ;;  %1430 = vmatprep.mubr.msk.f32.mxu1 %vm1890_vm0, %v1891_v4 }
 0x1eb   :  { %1713 = vmatprep.subr.bf16.mxu1 %v1889_v2 }
 0x1ee   :  { %1715 = vmatpush3.bf16.msra.mxu1 %v1973_v15 }
 0x1ef   :  { %1716 = vmatprep.subr.bf16.mxu1 %v1889_v2 }
 0x1f2   :  { %1718 = vmatpush3.bf16.msra.mxu1 %v1989_v21 }
 0x1f3   :  { %1719 = vmatprep.subr.bf16.mxu1 %v1889_v2 }
 0x1f6   :  { %1721 = vmatpush3.bf16.msra.mxu1 %v2008_v28 }
 0x1f7   :  { %1722 = vmatprep.subr.bf16.mxu1 %v1889_v2 }
 0x1fa   :  { %1724 = vmatpush3.bf16.msra.mxu1 %v2024_v34 }
 0x1fb   :  { %1725 = vmatprep.subr.bf16.mxu1 %v1889_v2 }
 0x1fe   :  { %1727 = vmatpush3.bf16.msra.mxu1 %v2040_v40 }
 0x1ff   :  { %1728 = vmatprep.subr.bf16.mxu1 %v1889_v2 }
 0x202   :  { %1730 = vmatpush3.bf16.msra.mxu1 %v2056_v46 }
 0x203   :  { %1731 = vmatprep.subr.bf16.mxu1 %v1889_v2 }
 0x206   :  { %1733 = vmatpush3.bf16.msra.mxu1 %v2066_v50 }
 0x207   :  { %1758 = vmatprep.subr.bf16.mxu1 %v1889_v2 }
 0x2bc   :  { %v407_v19 = vpop.f32.mrb[2].mxu1 }
 0x2bd   :  { %v411_v20 = vadd.f32 %v407_v19, %v136_v18  ;;  %v1362_v22 = vpop.f32.mrb[3].mxu1  ;;  %v161_v18 = vadd.f32 %v2163_v10, %v2135_v59 }
 0x2bf   :  { %1845 = vtanh.f32 %v411_v20 }
 0x2c9   :  { %v2190_v23 = vpop.eup %1845 }
 0x2ca   :  { %1396 = vmatmul.mubr.f32.vlgmr.msra.gmra.mrb[10].mxu0 %v2190_v23 }
 0x2cb   :  { %1736 = vmatpush3.bf16.msra.mxu0 %v1958_v9  ;;  %1465 = vmatprep.mubr.msk.f32.mxu0 %vm1890_vm0, %v1891_v4 }
 0x2cc   :  { %1737 = vmatprep.subr.bf16.mxu0 %v1889_v2 }
 0x2cf   :  { %1739 = vmatpush3.bf16.msra.mxu0 %v1973_v15 }
 0x2d0   :  { %1740 = vmatprep.subr.bf16.mxu0 %v1889_v2 }
 0x2d3   :  { %1742 = vmatpush3.bf16.msra.mxu0 %v1989_v21 }
 0x2d4   :  { %1743 = vmatprep.subr.bf16.mxu0 %v1889_v2 }
 0x2d7   :  { %1745 = vmatpush3.bf16.msra.mxu0 %v2008_v28 }
 0x2d8   :  { %1746 = vmatprep.subr.bf16.mxu0 %v1889_v2 }
 0x2db   :  { %1748 = vmatpush3.bf16.msra.mxu0 %v2024_v34 }
 0x2dc   :  { %1749 = vmatprep.subr.bf16.mxu0 %v1889_v2 }
 0x2df   :  { %1751 = vmatpush3.bf16.msra.mxu0 %v2040_v40 }
 0x2e0   :  { %1752 = vmatprep.subr.bf16.mxu0 %v1889_v2 }
 0x2e3   :  { %1754 = vmatpush3.bf16.msra.mxu0 %v2056_v46 }
 0x2e4   :  { %1755 = vmatprep.subr.bf16.mxu0 %v1889_v2 }
 0x2e7   :  { %1757 = vmatpush3.bf16.msra.mxu0 %v2066_v50 }
 0x2e8   :  { %1782 = vmatprep.subr.bf16.mxu0 %v1889_v2 }
 0x39d   :  { %v483_v25 = vpop.f32.mrb[10].mxu0 }
 0x39e   :  { %v487_v26 = vadd.f32 %v483_v25, %v141_v24  ;;  %v1397_v27 = vpop.f32.mrb[11].mxu0 }
 0x3a0   :  { %1847 = vtanh.f32 %v487_v26 }
 0x3aa   :  { %v2212_v29 = vpop.eup %1847 }
 0x3ab   :  { %1431 = vmatmul.mubr.f32.vlgmr.msra.gmra.mrb[4].mxu1 %v2212_v29 }
 0x3ac   :  { %1760 = vmatpush3.bf16.msra.mxu1 %v1958_v9  ;;  %1500 = vmatprep.mubr.msk.f32.mxu1 %vm1890_vm0, %v1891_v4 }
 0x3ad   :  { %1761 = vmatprep.subr.bf16.mxu1 %v1889_v2 }
 0x3b0   :  { %1763 = vmatpush3.bf16.msra.mxu1 %v1973_v15 }
 0x3b1   :  { %1764 = vmatprep.subr.bf16.mxu1 %v1889_v2 }
 0x3b4   :  { %1766 = vmatpush3.bf16.msra.mxu1 %v1989_v21 }
 0x3b5   :  { %1767 = vmatprep.subr.bf16.mxu1 %v1889_v2 }
 0x3b8   :  { %1769 = vmatpush3.bf16.msra.mxu1 %v2008_v28 }
 0x3b9   :  { %1770 = vmatprep.subr.bf16.mxu1 %v1889_v2 }
 0x3bc   :  { %1772 = vmatpush3.bf16.msra.mxu1 %v2024_v34 }
 0x3bd   :  { %1773 = vmatprep.subr.bf16.mxu1 %v1889_v2 }
 0x3c0   :  { %1775 = vmatpush3.bf16.msra.mxu1 %v2040_v40 }
 0x3c1   :  { %1776 = vmatprep.subr.bf16.mxu1 %v1889_v2 }
 0x3c4   :  { %1778 = vmatpush3.bf16.msra.mxu1 %v2056_v46 }
 0x3c5   :  { %1779 = vmatprep.subr.bf16.mxu1 %v1889_v2 }
 0x3c8   :  { %1781 = vmatpush3.bf16.msra.mxu1 %v2066_v50 }
 0x47e   :  { %v559_v31 = vpop.f32.mrb[4].mxu1 }
 0x47f   :  { %v563_v32 = vadd.f32 %v559_v31, %v146_v30  ;;  %v1432_v33 = vpop.f32.mrb[5].mxu1 }
 0x481   :  { %1849 = vtanh.f32 %v563_v32 }
 0x48b   :  { %v2234_v35 = vpop.eup %1849 }
 0x48c   :  { %1466 = vmatmul.mubr.f32.vlgmr.msra.gmra.mrb[12].mxu0 %v2234_v35 }
 0x48d   :  { %1784 = vmatpush3.bf16.msra.mxu0 %v1958_v9  ;;  %1535 = vmatprep.mubr.msk.f32.mxu0 %vm1890_vm0, %v1891_v4  ;;  %v804_v4 = vld [vmem:[%s2372_s5] sm:$0xff]  ;;  %v805_v9 = vld [vmem:[%s2372_s5 + $0x8] sm:$0xff] }
 0x48e   :  { %1785 = vmatprep.subr.bf16.mxu0 %v1889_v2 }
 0x491   :  { %1787 = vmatpush3.bf16.msra.mxu0 %v1973_v15  ;;  %v1806_v15 = vpack.c.bf16 %v805_v9, %v804_v4 }
 0x492   :  { %1788 = vmatprep.subr.bf16.mxu0 %v1889_v2 }
 0x493   :  { %1807 = vmatprep.subr.bf16.mxu1 %v1806_v15 }
 0x495   :  { %1790 = vmatpush3.bf16.msra.mxu0 %v1989_v21  ;;  %v151_v21 = vadd.f32 %v2159_v7, %v2135_v59 }
 0x496   :  { %1791 = vmatprep.subr.bf16.mxu0 %v1889_v2 }
 0x499   :  { %1793 = vmatpush3.bf16.msra.mxu0 %v2008_v28 }
 0x49a   :  { %1794 = vmatprep.subr.bf16.mxu0 %v1889_v2 }
 0x49d   :  { %1796 = vmatpush3.bf16.msra.mxu0 %v2024_v34 }
 0x49e   :  { %1797 = vmatprep.subr.bf16.mxu0 %v1889_v2 }
 0x4a1   :  { %1799 = vmatpush3.bf16.msra.mxu0 %v2040_v40  ;;  %v808_v40 = vld [vmem:[%s2372_s5 + $0x20] sm:$0xff] }
 0x4a2   :  { %1800 = vmatprep.subr.bf16.mxu0 %v1889_v2  ;;  %v1814_v42 = vpack.c.bf16 %v809_v41, %v808_v40 }
 0x4a5   :  { %1802 = vmatpush3.bf16.msra.mxu0 %v2056_v46  ;;  %v812_v46 = vld [vmem:[%s2372_s5 + $0x40] sm:$0xff] }
 0x4a6   :  { %1803 = vmatprep.subr.bf16.mxu0 %v1889_v2  ;;  %v806_v2 = vld [vmem:[%s2372_s5 + $0x10] sm:$0xff]  ;;  %v1822_v48 = vpack.c.bf16 %v813_v47, %v812_v46 }
 0x4a7   :  { %v1810_v38 = vpack.c.bf16 %v807_v37, %v806_v2 }
 0x4a9   :  { %1805 = vmatpush3.bf16.msra.mxu0 %v2066_v50  ;;  %v815_v50 = vld [vmem:[%s2372_s5 + $0x58] sm:$0xff] }
 0x4aa   :  { %v1826_v51 = vpack.c.bf16 %v815_v50, %v814_v49 }
 0x55f   :  { %v635_v28 = vpop.f32.mrb[12].mxu0 }
 0x560   :  { %v639_v34 = vadd.f32 %v635_v28, %v151_v21  ;;  %v1467_v36 = vpop.f32.mrb[13].mxu0 }
 0x562   :  { %1851 = vtanh.f32 %v639_v34 }
 0x56c   :  { %v1852_v39 = vpop.eup %1851 }
 0x56d   :  { %1501 = vmatmul.mubr.f32.vlgmr.msra.gmra.mrb[6].mxu1 %v1852_v39 }
 0x56e   :  { %1809 = vmatpush3.bf16.msra.mxu1 %v1806_v15  ;;  %1570 = vmatprep.mubr.f32.mxu1 %v2138_v3 }
 0x56f   :  { %1811 = vmatprep.subr.bf16.mxu1 %v1810_v38 }
 0x572   :  { %1813 = vmatpush3.bf16.msra.mxu1 %v1810_v38 }
 0x573   :  { %1815 = vmatprep.subr.bf16.mxu1 %v1814_v42 }
 0x576   :  { %1817 = vmatpush3.bf16.msra.mxu1 %v1814_v42 }
 0x577   :  { %1819 = vmatprep.subr.bf16.mxu1 %v1818_v45 }
 0x57a   :  { %1821 = vmatpush3.bf16.msra.mxu1 %v1818_v45 }
 0x57b   :  { %1823 = vmatprep.subr.bf16.mxu1 %v1822_v48 }
 0x57e   :  { %1825 = vmatpush3.bf16.msra.mxu1 %v1822_v48 }
 0x57f   :  { %1827 = vmatprep.subr.bf16.mxu1 %v1826_v51 }
 0x582   :  { %1829 = vmatpush3.bf16.msra.mxu1 %v1826_v51 }
 0x583   :  { %1831 = vmatprep.subr.bf16.mxu1 %v1830_v54 }
 0x586   :  { %1833 = vmatpush3.bf16.msra.mxu1 %v1830_v54 }
 0x587   :  { %1835 = vmatprep.subr.bf16.mxu1 %v1834_v57 }
 0x58a   :  { %1837 = vmatpush3.bf16.msra.mxu1 %v1834_v57 }
 0x58d   :  { %1571 = vmatmul.mubr.f32.vlgmr.msra.gmra.mrb[8].mxu1 %v2168_v17 }
 0x58e   :  { %1573 = vmatprep.mubr.f32.mxu1 %v2190_v23 }
 0x591   :  { %1574 = vmatmul.mubr.f32.gmra.mrb[10].mxu1 %v2212_v29 }
 0x592   :  { %1576 = vmatprep.mubr.f32.mxu1 %v2234_v35 }
 0x595   :  { %1577 = vmatmul.mubr.f32.gmra.mrb[12].mxu1 %v1852_v39 }
 0x640   :  { %v711_v60 = vpop.f32.mrb[6].mxu1 }
 0x641   :  { %v715_v61 = vadd.f32 %v711_v60, %v156_v58  ;;  %v1502_v62 = vpop.f32.mrb[7].mxu1 }
 0x643   :  { %1853 = vtanh.f32 %v715_v61 }
 0x64d   :  { %v1854_v63 = vpop.eup %1853 }
 0x64e   :  { %1536 = vmatmul.mubr.f32.vlgmr.msra.gmra.mrb[14].mxu0 %v1854_v63  ;;  %1579 = vmatprep.mubr.f32.mxu1 %v1854_v63 }
 0x660   :  { %v1572_v1 = vpop.f32.mrb[8].mxu1 }
 0x661   :  { %v899_v3 = vadd.f32 %v1572_v1, %v1029_v0  ;;  %v893_v5 = vpop.f32.mrb[9].mxu1 }
 0x662   :  { %v894_v7 = vadd.f32 %v1029_v0, %v893_v5 }
 0x663   :  { %934 = vmax.xlane.f32.xlu0 %v899_v3 }
 0x664   :  { %v1575_v6 = vpop.f32.mrb[10].mxu1 }
 0x665   :  { %v909_v8 = vadd.f32 %v1575_v6, %v1029_v0  ;;  %v903_v12 = vpop.f32.mrb[11].mxu1 }
 0x666   :  { %v904_v13 = vadd.f32 %v1029_v0, %v903_v12 }
 0x667   :  { %938 = vmax.xlane.f32.xlu1 %v909_v8  ;;  %932 = vmax.xlane.f32.xlu0 %v894_v7 }
 0x668   :  { %v1578_v11 = vpop.f32.mrb[12].mxu1 }
 0x669   :  { %v913_v14 = vpop.f32.mrb[13].mxu1  ;;  %v919_v17 = vadd.f32 %v1578_v11, %v1029_v0 }
 0x66a   :  { %v914_v16 = vadd.f32 %v1029_v0, %v913_v14 }
 0x66b   :  { %936 = vmax.xlane.f32.xlu1 %v904_v13 }
 0x66c   :  { %940 = vmax.xlane.f32.xlu0 %v914_v16 }
 0x66f   :  { %942 = vmax.xlane.f32.xlu1 %v919_v17 }
 0x6f0   :  { %v935_v24 = vpop.xlane.xlu0 %934 }
 0x6f1   :  { %v2319_v29 = vsub.f32 %v899_v3, %v935_v24 }
 0x6f3   :  { %v958_v59 = vmul.f32 1.442695, %v2319_v29 }
 0x6f4   :  { %v939_v25 = vpop.xlane.xlu1 %938  ;;  %v933_v26 = vpop.xlane.xlu0 %932 }
 0x6f5   :  { %v2321_v30 = vsub.f32 %v894_v7, %v933_v26  ;;  %v2324_v10 = vsub.f32 %v909_v8, %v939_v25 }
 0x6f7   :  { %v956_v31 = vmul.f32 1.442695, %v2321_v30  ;;  %v962_v4 = vmul.f32 1.442695, %v2324_v10 }
 0x6f8   :  { %v937_v27 = vpop.xlane.xlu1 %936 }
 0x6f9   :  { %v2327_v32 = vsub.f32 %v904_v13, %v937_v27  ;;  %v941_v35 = vpop.xlane.xlu0 %940 }
 0x6fa   :  { %v2333_v21 = vsub.f32 %v914_v16, %v941_v35 }
 0x6fb   :  { %v960_v15 = vmul.f32 1.442695, %v2327_v32 }
 0x6fc   :  { %v943_v33 = vpop.xlane.xlu1 %942  ;;  %v964_v36 = vmul.f32 1.442695, %v2333_v21 }
 0x6fd   :  { %v2330_v9 = vsub.f32 %v919_v17, %v943_v33 }
 0x6ff   :  { %v966_v28 = vmul.f32 1.442695, %v2330_v9 }
 0x721   :  { %v787_v19 = vpop.f32.mrb[14].mxu0 }
 0x722   :  { %v791_v20 = vadd.f32 %v787_v19, %v161_v18  ;;  %v1537_v22 = vpop.f32.mrb[15].mxu0 }
 0x724   :  { %1855 = vtanh.f32 %v791_v20 }
 0x725   :  { %1857 = vpow2.f32 %v958_v59 }
 0x726   :  { %1859 = vpow2.f32 %v956_v31 }
 0x727   :  { %1861 = vpow2.f32 %v962_v4 }
 0x728   :  { %1863 = vpow2.f32 %v960_v15 }
 0x729   :  { %1865 = vpow2.f32 %v966_v28 }
 0x72a   :  { %1867 = vpow2.f32 %v964_v36 }
 0x72e   :  { %v1856_v23 = vpop.eup %1855 }
 0x72f   :  { %795 = vst [vmem:[%s2374_s8] sm:$0xff] %v1856_v23  ;;  %1580 = vmatmul.mubr.f32.gmra.mrb[14].mxu1 %v1856_v23  ;;  %v1858_v39 = vpop.eup %1857 }
 0x730   :  { %v1860_v40 = vpop.eup %1859 }
 0x731   :  { %v1862_v41 = vpop.eup %1861 }
 0x732   :  { %v1864_v42 = vpop.eup %1863 }
 0x733   :  { %v1866_v43 = vpop.eup %1865 }
 0x734   :  { %v1868_v44 = vpop.eup %1867 }
 0x802   :  { %v1581_v34 = vpop.f32.mrb[14].mxu1 }
 0x803   :  { %v929_v2 = vadd.f32 %v1581_v34, %v1029_v0  ;;  %v923_v37 = vpop.f32.mrb[15].mxu1 }
 0x804   :  { %v924_v38 = vadd.f32 %v1029_v0, %v923_v37 }
 0x805   :  { %946 = vmax.xlane.f32.xlu1 %v929_v2 }
 0x806   :  { %944 = vmax.xlane.f32.xlu0 %v924_v38 }
 0x809   :  { %974 = vadd.xlane.f32.xlu1 %v1858_v39 }
 0x80a   :  { %972 = vadd.xlane.f32.xlu0 %v1860_v40 }
 0x80d   :  { %978 = vadd.xlane.f32.xlu1 %v1862_v41 }
 0x80e   :  { %976 = vadd.xlane.f32.xlu0 %v1864_v42 }
 0x811   :  { %982 = vadd.xlane.f32.xlu1 %v1866_v43 }
 0x812   :  { %980 = vadd.xlane.f32.xlu0 %v1868_v44 }
 0x892   :  { %v947_v45 = vpop.xlane.xlu1 %946 }
 0x893   :  { %v955_v46 = vsub.f32 %v929_v2, %v947_v45  ;;  %v945_v47 = vpop.xlane.xlu0 %944 }
 0x894   :  { %v954_v48 = vsub.f32 %v924_v38, %v945_v47 }
 0x895   :  { %v970_v49 = vmul.f32 1.442695, %v955_v46 }
 0x896   :  { %v968_v50 = vmul.f32 1.442695, %v954_v48  ;;  %v975_v51 = vpop.xlane.xlu1 %974 }
 0x897   :  { %1869 = vpow2.f32 %v970_v49  ;;  %v973_v52 = vpop.xlane.xlu0 %972 }
 0x898   :  { %1871 = vpow2.f32 %v968_v50 }
 0x899   :  { %1873 = vlog2.f32 %v975_v51 }
 0x89a   :  { %1875 = vlog2.f32 %v973_v52  ;;  %v979_v53 = vpop.xlane.xlu1 %978 }
 0x89b   :  { %1877 = vlog2.f32 %v979_v53  ;;  %v977_v54 = vpop.xlane.xlu0 %976 }
 0x89c   :  { %1879 = vlog2.f32 %v977_v54 }
 0x89e   :  { %v983_v55 = vpop.xlane.xlu1 %982 }
 0x89f   :  { %1881 = vlog2.f32 %v983_v55  ;;  %v981_v56 = vpop.xlane.xlu0 %980 }
 0x8a0   :  { %1883 = vlog2.f32 %v981_v56 }
 0x8a1   :  { %v1870_v57 = vpop.eup %1869 }
 0x8a2   :  { %v1872_v58 = vpop.eup %1871  ;;  %986 = vadd.xlane.f32.xlu1 %v1870_v57 }
 0x8a3   :  { %v1874_v60 = vpop.eup %1873  ;;  %984 = vadd.xlane.f32.xlu0 %v1872_v58 }
 0x8a4   :  { %v1876_v61 = vpop.eup %1875  ;;  %v991_v62 = vmul.f32 0.6931472, %v1874_v60 }
 0x8a5   :  { %v1878_v63 = vpop.eup %1877  ;;  %v989_v0 = vmul.f32 0.6931472, %v1876_v61 }
 0x8a6   :  { %v1880_v1 = vpop.eup %1879  ;;  %v1005_v3 = vsub.f32 %v2319_v29, %v991_v62  ;;  %v995_v5 = vmul.f32 0.6931472, %v1878_v63 }
 0x8a7   :  { %v1004_v6 = vsub.f32 %v2321_v30, %v989_v0  ;;  %v993_v7 = vmul.f32 0.6931472, %v1880_v1 }
 0x8a8   :  { %1013 = vst [vmem:[%s2375_s7 + $0x8] sm:$0xff] %v1005_v3  ;;  %v1007_v8 = vsub.f32 %v2324_v10, %v995_v5 }
 0x8a9   :  { %v1882_v12 = vpop.eup %1881  ;;  %1012 = vst [vmem:[%s2375_s7] sm:$0xff] %v1004_v6  ;;  %v1006_v11 = vsub.f32 %v2327_v32, %v993_v7 }
 0x8aa   :  { %v1884_v13 = vpop.eup %1883  ;;  %1015 = vst [vmem:[%s2375_s7 + $0x18] sm:$0xff] %v1007_v8  ;;  %v999_v14 = vmul.f32 0.6931472, %v1882_v12 }
 0x8ab   :  { %1014 = vst [vmem:[%s2375_s7 + $0x10] sm:$0xff] %v1006_v11  ;;  %v997_v16 = vmul.f32 0.6931472, %v1884_v13 }
 0x8ac   :  { %v1009_v17 = vsub.f32 %v2330_v9, %v999_v14 }
 0x8ad   :  { %v1008_v18 = vsub.f32 %v2333_v21, %v997_v16 }
 0x8ae   :  { %1017 = vst [vmem:[%s2375_s7 + $0x28] sm:$0xff] %v1009_v17 }
 0x8af   :  { %1016 = vst [vmem:[%s2375_s7 + $0x20] sm:$0xff] %v1008_v18 }
 0x92f   :  { %v987_v19 = vpop.xlane.xlu1 %986 }
 0x930   :  { %1885 = vlog2.f32 %v987_v19  ;;  %v985_v20 = vpop.xlane.xlu0 %984 }
 0x931   :  { %1887 = vlog2.f32 %v985_v20 }
 0x93a   :  { %v1886_v22 = vpop.eup %1885 }
 0x93b   :  { %v1888_v23 = vpop.eup %1887  ;;  %v1003_v24 = vmul.f32 0.6931472, %v1886_v22 }
 0x93c   :  { %v1001_v25 = vmul.f32 0.6931472, %v1888_v23 }
 0x93d   :  { %v1011_v26 = vsub.f32 %v955_v46, %v1003_v24 }
 0x93e   :  { %v1010_v27 = vsub.f32 %v954_v48, %v1001_v25 }
 0x93f   :  { %1019 = vst [vmem:[%s2375_s7 + $0x38] sm:$0xff] %v1011_v26 }
 0x940   :  { %1018 = vst [vmem:[%s2375_s7 + $0x30] sm:$0xff] %v1010_v27 }

</bundles_post_ra>
